<compile_context>
chip_gen: v5e
topology: v5e:2x2
jax: 0.10.0
libtpu: 0.0.40
codegen_flags: <defaults>
</compile_context>

<pallas_src>
import functools

import jax
import jax.numpy as jnp
from jax.experimental import pallas as pl
from jax.experimental.pallas import tpu as pltpu


def se_kernel(x_ref, w1t_ref, b1_ref, w2t_ref, b2_ref, o_ref, *, inv_l):
    # x_ref / o_ref: (bn, C, L)   w1t_ref: (C, Cr)   b1_ref: (1, Cr)
    # w2t_ref: (Cr, C)            b2_ref: (1, C)

    # Squeeze: mean over L (sum along the lane axis, divide by true L).
    s = jnp.sum(x_ref[...], axis=2) * inv_l                     # (bn, C) f32

    # Excitation: conv1 (1x1) + ReLU, then conv2 (1x1).
    h = jnp.dot(s, w1t_ref[...], preferred_element_type=jnp.float32)
    h = jnp.maximum(h + b1_ref[...], 0.0)                       # (bn, Cr)
    g = jnp.dot(h, w2t_ref[...], preferred_element_type=jnp.float32)
    g = g + b2_ref[...]                                         # (bn, C)
    gate = jax.nn.sigmoid(g)                                    # (bn, C)

    # Apply: re-read the already-resident VMEM input block (cheap vld) instead of
    # keeping a multi-MiB value live across the gate math (which would spill).
    o_ref[...] = (x_ref[...] + gate[:, :, None]).astype(o_ref.dtype)


def _round_up(x, m):
    return ((x + m - 1) // m) * m


def se_module(x, w1, b1, w2, b2, *, max_block_batch=None, vmem_budget_bytes=None):
    """x: (N, C, L); w1: (Cr, C); b1: (Cr,); w2: (C, Cr); b2: (C,)."""
    N, C, L = x.shape
    Cr = w1.shape[0]
    bytes_per_elt = jnp.dtype(x.dtype).itemsize

    # Per-TC VMEM capacity for budgeting only (the array itself is never padded).
    try:
        vmem_cap = int(pltpu.get_tpu_info().vmem_capacity_bytes)
    except Exception:
        vmem_cap = 64 * 1024 * 1024            # conservative (v7x-sized) fallback
    if vmem_budget_bytes is None:
        # ~38 MiB on v7x (64 MiB VMEM), ~77 MiB on v5e/v6e (128 MiB VMEM).
        vmem_budget_bytes = int(0.6 * vmem_cap)

    # Internal VMEM tile padding used for sizing arithmetic only.
    Cp = _round_up(C, 8)
    Lp = _round_up(L, 128)

    # Double-buffered input + output blocks: 4 x (bn * Cp * Lp) elements.
    per_sample_bytes = 4 * Cp * Lp * bytes_per_elt
    bn = max(1, vmem_budget_bytes // per_sample_bytes)
    bn = int(min(bn, N))
    if max_block_batch is not None:
        bn = int(min(bn, max_block_batch))
    # Guarantee >= 2 grid blocks so the "parallel" axis can split across the two
    # TensorCores on v7x (and costs nothing elsewhere).
    if N >= 2:
        bn = min(bn, -(-N // 2))
    # Sublane-align the pooled (bn, C) matrix / gate-matmul M dim when possible.
    if bn >= 8:
        bn = (bn // 8) * 8
    bn = max(1, int(bn))
    n_blocks = -(-N // bn)
    # TODO(synk): if even bn == 1 exceeds the budget (huge C*L slabs on v7x's
    # 64 MiB VMEM), switch to a two-pass reduce-then-apply structure that tiles L.

    # Row-major parameters: no in-kernel transposes / XLU relayouts.
    w1t = w1.T                       # (C, Cr)
    w2t = w2.T                       # (Cr, C)
    b1_2d = b1.reshape(1, Cr)
    b2_2d = b2.reshape(1, C)

    param_bytes = sum(int(a.size) * jnp.dtype(a.dtype).itemsize
                      for a in (w1t, b1_2d, w2t, b2_2d))
    # VMEM limit derived from actual usage + headroom for Mosaic internal scratch.
    vmem_limit = 4 * bn * Cp * Lp * bytes_per_elt + 2 * param_bytes + 8 * 1024 * 1024
    vmem_limit = int(max(min(vmem_limit, vmem_cap), 16 * 1024 * 1024))

    kernel = functools.partial(se_kernel, inv_l=1.0 / L)

    cost = pl.CostEstimate(
        flops=2 * N * C * L + 4 * N * C * Cr,
        transcendentals=N * C,
        bytes_accessed=2 * N * C * L * bytes_per_elt + param_bytes,
    )

    return pl.pallas_call(
        kernel,
        out_shape=jax.ShapeDtypeStruct((N, C, L), x.dtype),
        grid_spec=pltpu.PrefetchScalarGridSpec(
            num_scalar_prefetch=0,
            grid=(n_blocks,),
            in_specs=[
                pl.BlockSpec((bn, C, L), lambda n: (n, 0, 0)),
                pl.BlockSpec((C, Cr), lambda n: (0, 0)),
                pl.BlockSpec((1, Cr), lambda n: (0, 0)),
                pl.BlockSpec((Cr, C), lambda n: (0, 0)),
                pl.BlockSpec((1, C), lambda n: (0, 0)),
            ],
            out_specs=pl.BlockSpec((bn, C, L), lambda n: (n, 0, 0)),
        ),
        compiler_params=pltpu.CompilerParams(
            dimension_semantics=("parallel",),
            vmem_limit_bytes=vmem_limit,
        ),
        cost_estimate=cost,
    )(x, w1t, b1_2d, w2t, b2_2d)


def se_reference(x, w1, b1, w2, b2):
    # Plain-JAX reference of the PyTorch forward.
    s = jnp.mean(x, axis=2, keepdims=True)                        # (N, C, 1)
    h = jnp.einsum("rc,ncl->nrl", w1, s) + b1[None, :, None]      # (N, Cr, 1)
    h = jnp.maximum(h, 0.0)
    g = jnp.einsum("cr,nrl->ncl", w2, h) + b2[None, :, None]      # (N, C, 1)
    return x + jax.nn.sigmoid(g)


if __name__ == "__main__":
    # Small shapes chosen to exercise: two grid blocks (megacore path), a partial
    # last batch block (N=7 with bn=4), and a masked lane tail (L=160 = 128+32).
    N, C, L = 7, 16, 160
    reduction = 4
    Cr = C // reduction

    key = jax.random.PRNGKey(0)
    kx, k1, k2, k3, k4 = jax.random.split(key, 5)

    x = jax.random.normal(kx, (N, C, L), dtype=jnp.float32)
    # Same shapes as nn.Conv1d weights with kernel_size=1 (k-dim squeezed).
    w1 = jax.random.normal(k1, (Cr, C), dtype=jnp.float32) * 0.1   # conv1.weight
    b1 = jax.random.normal(k2, (Cr,), dtype=jnp.float32) * 0.1     # conv1.bias
    w2 = jax.random.normal(k3, (C, Cr), dtype=jnp.float32) * 0.1   # conv2.weight
    b2 = jax.random.normal(k4, (C,), dtype=jnp.float32) * 0.1      # conv2.bias

    out = se_module(x, w1, b1, w2, b2)
    out = jax.block_until_ready(out)

    ref = se_reference(x, w1, b1, w2, b2)
    assert out.shape == (N, C, L)
    assert jnp.allclose(out, ref, atol=1e-5, rtol=1e-5), "mismatch vs reference"

    print("KERNEL_OK")
</pallas_src>

<mosaic_0001>
module attributes {stable_mosaic.version = 11 : i64} {
  func.func @se_kernel(%arg0: i32, %arg1: memref<4x16x160xf32, #tpu.memory_space<vmem>>, %arg2: memref<16x4xf32, #tpu.memory_space<vmem>>, %arg3: memref<1x4xf32, #tpu.memory_space<vmem>>, %arg4: memref<4x16xf32, #tpu.memory_space<vmem>>, %arg5: memref<1x16xf32, #tpu.memory_space<vmem>>, %arg6: memref<4x16x160xf32, #tpu.memory_space<vmem>>) attributes {dimension_semantics = [#tpu.dimension_semantics<parallel>], iteration_bounds = array<i64: 2>, scalar_prefetch = 0 : i64, scratch_operands = 0 : i64, tpu.core_type = #tpu.core_type<tc>, window_params = [{transform_indices = @transform_0, window_bounds = array<i64: 4, 16, 160>}, {pipeline_mode = #tpu.pipeline_mode<synchronous>, transform_indices = @transform_1, window_bounds = array<i64: 16, 4>}, {pipeline_mode = #tpu.pipeline_mode<synchronous>, transform_indices = @transform_2, window_bounds = array<i64: 1, 4>}, {pipeline_mode = #tpu.pipeline_mode<synchronous>, transform_indices = @transform_3, window_bounds = array<i64: 4, 16>}, {pipeline_mode = #tpu.pipeline_mode<synchronous>, transform_indices = @transform_4, window_bounds = array<i64: 1, 16>}, {transform_indices = @transform_5, window_bounds = array<i64: 4, 16, 160>}]} {
    %c0 = arith.constant 0 : index
    %c0_0 = arith.constant 0 : index
    %c0_1 = arith.constant 0 : index
    %0 = vector.load %arg1[%c0, %c0_0, %c0_1] : memref<4x16x160xf32, #tpu.memory_space<vmem>>, vector<4x16x160xf32>
    %cst = arith.constant dense<0.000000e+00> : vector<4x16xf32>
    %1 = vector.multi_reduction <add>, %0, %cst [2] : vector<4x16x160xf32> to vector<4x16xf32>
    %cst_2 = arith.constant 6.250000e-03 : f32
    %2 = vector.broadcast %cst_2 : f32 to vector<4x16xf32>
    %3 = arith.mulf %1, %2 : vector<4x16xf32>
    %c0_3 = arith.constant 0 : index
    %c0_4 = arith.constant 0 : index
    %4 = vector.load %arg2[%c0_3, %c0_4] : memref<16x4xf32, #tpu.memory_space<vmem>>, vector<16x4xf32>
    %cst_5 = arith.constant dense<0.000000e+00> : vector<4x4xf32>
    %5 = tpu.matmul %3, %4, %cst_5 {dimension_numbers = #tpu.dot_dimension_numbers<[1], [0], [0], [1], [0, 0, 1, 1], [], []>} : vector<4x16xf32>, vector<16x4xf32>, vector<4x4xf32> -> vector<4x4xf32>
    %c0_6 = arith.constant 0 : index
    %c0_7 = arith.constant 0 : index
    %6 = vector.load %arg3[%c0_6, %c0_7] : memref<1x4xf32, #tpu.memory_space<vmem>>, vector<1x4xf32>
    %7 = vector.broadcast %6 : vector<1x4xf32> to vector<4x4xf32>
    %8 = arith.addf %5, %7 : vector<4x4xf32>
    %cst_8 = arith.constant 0.000000e+00 : f32
    %9 = vector.broadcast %cst_8 : f32 to vector<4x4xf32>
    %10 = arith.maximumf %8, %9 : vector<4x4xf32>
    %c0_9 = arith.constant 0 : index
    %c0_10 = arith.constant 0 : index
    %11 = vector.load %arg4[%c0_9, %c0_10] : memref<4x16xf32, #tpu.memory_space<vmem>>, vector<4x16xf32>
    %cst_11 = arith.constant dense<0.000000e+00> : vector<4x16xf32>
    %12 = tpu.matmul %10, %11, %cst_11 {dimension_numbers = #tpu.dot_dimension_numbers<[1], [0], [0], [1], [0, 0, 1, 1], [], []>} : vector<4x4xf32>, vector<4x16xf32>, vector<4x16xf32> -> vector<4x16xf32>
    %c0_12 = arith.constant 0 : index
    %c0_13 = arith.constant 0 : index
    %13 = vector.load %arg5[%c0_12, %c0_13] : memref<1x16xf32, #tpu.memory_space<vmem>>, vector<1x16xf32>
    %14 = vector.broadcast %13 : vector<1x16xf32> to vector<4x16xf32>
    %15 = arith.addf %12, %14 : vector<4x16xf32>
    %16 = arith.negf %15 : vector<4x16xf32>
    %17 = math.exp %16 : vector<4x16xf32>
    %cst_14 = arith.constant 1.000000e+00 : f32
    %18 = vector.broadcast %cst_14 : f32 to vector<4x16xf32>
    %19 = arith.addf %18, %17 : vector<4x16xf32>
    %20 = arith.divf %18, %19 : vector<4x16xf32>
    %c0_15 = arith.constant 0 : index
    %c0_16 = arith.constant 0 : index
    %c0_17 = arith.constant 0 : index
    %21 = vector.load %arg1[%c0_15, %c0_16, %c0_17] : memref<4x16x160xf32, #tpu.memory_space<vmem>>, vector<4x16x160xf32>
    %22 = vector.shape_cast %20 : vector<4x16xf32> to vector<4x16x1xf32>
    %23 = vector.broadcast %22 : vector<4x16x1xf32> to vector<4x16x160xf32>
    %24 = arith.addf %21, %23 : vector<4x16x160xf32>
    %c0_18 = arith.constant 0 : index
    %c0_19 = arith.constant 0 : index
    %c0_20 = arith.constant 0 : index
    %25 = vector.load %arg6[%c0_18, %c0_19, %c0_20] : memref<4x16x160xf32, #tpu.memory_space<vmem>>, vector<4x16x160xf32>
    tpu.vector_store %arg6[%c0_18, %c0_19, %c0_20], %24 {strides = array<i32>} : memref<4x16x160xf32, #tpu.memory_space<vmem>>, vector<4x16x160xf32>,
    return
  }
  func.func @transform_0(%arg0: i32) -> (i32, i32, i32) {
    %c0_i32 = arith.constant 0 : i32
    %c0_i32_0 = arith.constant 0 : i32
    %c0_i32_1 = arith.constant 0 : i32
    return %arg0, %c0_i32, %c0_i32_0 : i32, i32, i32
  }
  func.func @transform_1(%arg0: i32) -> (i32, i32) {
    %c0_i32 = arith.constant 0 : i32
    %c0_i32_0 = arith.constant 0 : i32
    %c0_i32_1 = arith.constant 0 : i32
    return %c0_i32, %c0_i32_0 : i32, i32
  }
  func.func @transform_2(%arg0: i32) -> (i32, i32) {
    %c0_i32 = arith.constant 0 : i32
    %c0_i32_0 = arith.constant 0 : i32
    %c0_i32_1 = arith.constant 0 : i32
    return %c0_i32, %c0_i32_0 : i32, i32
  }
  func.func @transform_3(%arg0: i32) -> (i32, i32) {
    %c0_i32 = arith.constant 0 : i32
    %c0_i32_0 = arith.constant 0 : i32
    %c0_i32_1 = arith.constant 0 : i32
    return %c0_i32, %c0_i32_0 : i32, i32
  }
  func.func @transform_4(%arg0: i32) -> (i32, i32) {
    %c0_i32 = arith.constant 0 : i32
    %c0_i32_0 = arith.constant 0 : i32
    %c0_i32_1 = arith.constant 0 : i32
    return %c0_i32, %c0_i32_0 : i32, i32
  }
  func.func @transform_5(%arg0: i32) -> (i32, i32, i32) {
    %c0_i32 = arith.constant 0 : i32
    %c0_i32_0 = arith.constant 0 : i32
    %c0_i32_1 = arith.constant 0 : i32
    return %arg0, %c0_i32, %c0_i32_0 : i32, i32, i32
  }
}

</mosaic_0001>

<bundles_post_ra>
// kernel: tpu_custom_call.1
= control target key start
LH: loop header
LB: loop body
LE: loop exit
PB: predicated region body
PF: predicated region fallthrough
CT: control target
= control target key end

     0   :  { %10 = vsyncpa [#allocation3], 0  ;;  %s1191_s0 = inlined_call_operand.hbm [shape: f32[7,16,160], index: 0, kind: input, shape index: {}]   ;;  %s1192_s1 = inlined_call_operand.vmem [shape: f32[16,4], index: 1, kind: input, shape index: {}]   ;;  %s1193_s2 = inlined_call_operand.vmem [shape: f32[1,4], index: 2, kind: input, shape index: {}]   ;;  %s1194_s3 = inlined_call_operand.vmem [shape: f32[4,16], index: 3, kind: input, shape index: {}]   ;;  %s1195_s4 = inlined_call_operand.vmem [shape: f32[1,16], index: 4, kind: input, shape index: {}]   ;;  %s1196_s5 = inlined_call_operand.hbm [shape: f32[7,16,160], index: 5, kind: output, shape index: {}]  }
   0x1   :  { %12 = vsyncpa [#allocation3 + $0x1], 0 }
   0x2   :  { %13 = vsyncpa [#allocation4], 0 }
   0x3   :  { %15 = vsyncpa [#allocation4 + $0x1], 0  ;;  %s878_s18 = smov 0   ;;  %s880_s19 = smov 0  }
   0x4   :  { %s882_s20 = smov 0   ;;  %s884_s21 = smov 0  }
   0x5 LB: > { %s899_s22 = sadd.s32 4294967295, %s840_s21   ;;  %s623_s23 = sadd.s32 4294967294, %s840_s21   ;;  %s840_s21 = sphi %s884_s21, %s1209_s21   ;;  %s836_s20 = sphi %s882_s20, %s1208_s20   ;;  %s832_s19 = sphi %s880_s19, %s1207_s19   ;;  %s828_s18 = sphi %s878_s18, %s1206_s18  }
   0x6   : > { %s903_s24 = sadd.s32 1, %s840_s21   ;;  %s28_s25 = sadd.s32 1, %s836_s20 }
   0x7   : > { %s25_s26 = ssub.s32 %s840_s21, %s903_s24  ;;  %p35_p0 = scmp.ne.s32.totalorder %s836_s20, %s832_s19 }
   0x8   : > { %p26_p1 = scmp.eq.s32.totalorder %s25_s26, 0  ;;  %p36_p2 = scmp.eq.s32.totalorder %s840_s21, 0 }
   0x9   : > { %p41_p3 = scmp.ne.s32.totalorder %s832_s19, %s828_s18  ;;  %p42_p4 = scmp.eq.s32.totalorder %s899_s22, 0 }
   0xa   : > { %s915_s27 = scalar_select %p26_p1, %s836_s20, %s28_s25  }
   0xb   : > { %p37_p5 = por %p36_p2, %p35_p0  ;;  %p917_p6 = por %p42_p4, %p41_p3 }
   0xc   : > { %p149_p7 = scmp.eq.s32.totalorder %s899_s22, 1  ;;  %p155_p8 = scmp.eq.s32.totalorder %s623_s23, 1 }
   0xd   : > { %p1198_p11 = scmp.ge.s32.totalorder %s840_s21, 2 }
   0xe   : > { %p922_p9 = por %p149_p7, %p35_p0  ;;  %p926_p10 = por %p155_p8, %p41_p3 }
   0xf   : > { %183 = sbr.rel (%p1198_p11) target bundleno = 57 (0x39), region = 32 }
  0x14   : > { %186 = sbr.rel (!%p37_p5) target bundleno = 57 (0x39), region = 36  ;;  %s187_s6 = sand.u32 (%p37_p5), 1, %s836_s20  }
  0x15   : > { %s627_s7 = sshll.u32 (%p37_p5), %s840_s21, 2  ;;  %s626_s8 = sshll.u32 (%p37_p5), %s187_s6, 7 }
  0x16   : > { %s193_s9 = ssub.s32 (%p37_p5), 7, %s627_s7  ;;  %s938_s13 = scalar_lea.sflag (%p37_p5), [#allocation3], %s187_s6 }
  0x17   : > { %p194_p12 = scmp.lt.s32.totalorder (%p37_p5), %s193_s9, 4  ;;  %s191_s14 = scalar_lea.vmem (%p37_p5), [#allocation2], %s626_s8 }
  0x19   : > { %s1211_s9 = smov (!%p194_p12, %s193_s9), 4 }
  0x1a   : > { %s658_s10 = sshll.u32 %s1211_s9, 5 }
  0x1b   : > { %s199_s11 = ssub.s32 128, %s658_s10 }
  0x1c   : > { %s200_s12 = sshll.u32 %s199_s11, 4 }
  0x1d   : > { %201 = vsyncadd %s938_s13, %s200_s12  ;;  %p941_p13 = scmp.ne.s32.totalorder %s658_s10, 0  ;;  %s660_s16 = sshll.u32 %s840_s21, 7 }
  0x1e   : > { %s205_s25 = scalar_lea.hbm %s1191_s0, %s660_s16  ;;  %s949_s26 = sshll.u32 %s191_s14, 4  ;;  %s211_s26 = int_to_ptr.vmem [resolvable:$true] %s949_s26 }
  0x1f   : > { %s208_s6 = sshll.u32 %s205_s25, 4  ;;  %s1197_s7 = sshll.u32 %s1211_s9, 9  ;;  %s952_s6 = int_to_ptr.hbm [resolvable:$true] %s208_s6 }
  0x20   : > { %s724_s8 = sshra.s32 %s952_s6, 4  ;;  %s726_s10 = sshrl.u32 %s1197_s7, 4  ;;  %s725_s8 = int_to_ptr.hbm [resolvable:$true] %s724_s8 }
  0x21   : > { %s731_s11 = scalar_lea.hbm %s725_s8, %s726_s10  ;;  %s735_s14 = scalar_lea.hbm %s1191_s0, 224 }
  0x22   : > { %p732_p0 = scmp.ne.s32.totalorder %s725_s8, %s731_s11  ;;  %p736_p3 = scmp.lt.s32.totalorder %s725_s8, %s1191_s0 }
  0x23   : > { %p737_p4 = scmp.lt.s32.totalorder %s735_s14, %s731_s11 }
  0x24   : > { %p733_p1 = pnand %p732_p0, %p941_p13 }
  0x25   : > { %p738_p5 = por %p737_p4, %p736_p3 }
  0x26   : > { %p734_p2 = pneg %p733_p1 }
  0x28   : > { %p739_p7 = pnand %p738_p5, %p734_p2 }
  0x2a   : > { %742 = shalt.err (!%p739_p7)
}
  0x2b   : > { %s743_s25 = sshra.s32 %s211_s26, 4  ;;  %s842_s12 = smov [#allocation2]   ;;  %s744_s25 = int_to_ptr.vmem [resolvable:$true] %s743_s25 }
  0x2c   : > { %s750_s7 = scalar_lea.vmem %s744_s25, %s726_s10  ;;  %s754_s16 = scalar_lea.vmem %s842_s12, 256 }
  0x2d   : > { %p751_p8 = scmp.ne.s32.totalorder %s744_s25, %s750_s7  ;;  %p756_p1 = scmp.lt.s32.totalorder %s754_s16, %s750_s7 }
  0x2f   : > { %p752_p12 = pnand %p751_p8, %p941_p13 }
  0x31   : > { %p753_p0 = pneg %p752_p12 }
  0x33   : > { %p758_p11 = pnand %p756_p1, %p753_p0 }
  0x35   : > { %761 = shalt.err (!%p758_p11)
}
  0x36   : > { %s843_s8 = smov 256   ;;  %s844_s11 = smov 16  }
  0x37   : > { %s1203_s14 = sshll.u32 %s1211_s9, 9 }
  0x38   : > { %216 = dma.hbm_to_vmem [thread:$0]  (%p941_p13), %s952_s6, %s1203_s14, %s211_s26, %s938_s13, %s843_s8, %s843_s8, %s844_s11  }
  0x39 PF: > { %p637_p2 = scmp.ge.s32.totalorder %s840_s21, 1  ;;  %p218_p3 = scmp.lt.s32.totalorder %s840_s21, 3 }
  0x3b   : > { %p219_p4 = pnand %p637_p2, %p218_p3 }
  0x3c   : > { %s981_s7 = sand.u32 (!%p219_p4), 1, %s832_s19  }
  0x3d   : > { %222 = sbr.rel (%p219_p4) target bundleno = 673 (0x2a1), region = 40  ;;  %s638_s10 = sshll.u32 (!%p219_p4), %s981_s7, 7 }
  0x3e   : > { %s225_s15 = scalar_lea.sflag (!%p219_p4), [#allocation3], %s981_s7  ;;  %s987_s9 = scalar_lea.vmem (!%p219_p4), [#allocation2], %s638_s10 }
  0x42   : > { %819 = dma.done.wait (%p917_p6), %s225_s15, 2048  }
  0x43   : > { %821 = vsyncadd (%p917_p6), %s225_s15, 4294965248  ;;  %vm286_vm0 = vcmask 261120   ;;  %v994_v0 = vld [vmem:[%s987_s9 + $0x40] sm:$0xff]  ;;  %v997_v1 = vld [vmem:[%s987_s9 + $0x48] sm:$0xff]  ;;  %v341_v37 = vlaneseq  ;;  %vm346_vm1 = vcmask 130112   ;;  %vm357_vm2 = vcmask 1041409  }
  0x44   : > { %v1000_v2 = vld [vmem:[%s987_s9 + $0x20] sm:$0xff]  ;;  %v303_v3 = vsel %vm286_vm0, %v997_v1, 0.0  ;;  %v1005_v4 = vld [vmem:[%s987_s9 + $0x28] sm:$0xff]  ;;  %v1019_v10 = vld [vmem:[%s987_s9 + $0x58] sm:$0xff]  ;;  %vm359_vm3 = vcmask 1042434   ;;  %vm361_vm4 = vcmask 1043459  }
  0x45   : > { %v1008_v5 = vld [vmem:[%s987_s9] sm:$0xff]  ;;  %v1011_v6 = vld [vmem:[%s987_s9 + $0x8] sm:$0xff]  ;;  %v304_v7 = vadd.f32 %v303_v3, %v994_v0  ;;  %v295_v8 = vsel %vm286_vm0, %v1005_v4, 0.0  ;;  %v1024_v13 = vld [vmem:[%s987_s9 + $0x38] sm:$0xff]  ;;  %v307_v16 = vsel %vm286_vm0, %v1019_v10, 0.0  ;;  %v342_v38 = vand.u32 127, %v341_v37 }
  0x46   : > { %v287_v9 = vsel %vm286_vm0, %v1011_v6, 0.0  ;;  %v296_v11 = vadd.f32 %v295_v8, %v1000_v2  ;;  %v1027_v14 = vld [vmem:[%s987_s9 + $0x18] sm:$0xff]  ;;  %v1030_v15 = vld [vmem:[%s987_s9 + $0x50] sm:$0xff]  ;;  %v299_v18 = vsel %vm286_vm0, %v1024_v13, 0.0  ;;  %v1051_v25 = vld [vmem:[%s987_s9 + $0x68] sm:$0xff]  ;;  %vm363_vm5 = vcmask 130048  }
  0x47   : > { %v288_v12 = vadd.f32 %v287_v9, %v1008_v5  ;;  %305 = vadd.xlane.f32.xlu2 %v304_v7  ;;  %v1035_v17 = vld [vmem:[%s987_s9 + $0x30] sm:$0xff]  ;;  %v291_v20 = vsel %vm286_vm0, %v1027_v14, 0.0  ;;  %v308_v21 = vadd.f32 %v307_v16, %v1030_v15  ;;  %v1048_v24 = vld [vmem:[%s987_s9 + $0x78] sm:$0xff]  ;;  %v1059_v28 = vld [vmem:[%s987_s9 + $0x60] sm:$0xff]  ;;  %v311_v29 = vsel %vm286_vm0, %v1051_v25, 0.0  ;;  %s1088_s11 = scalar_lea.vmem [#allocation5], %s638_s10 }
  0x48   : > { %297 = vadd.xlane.f32.xlu1 %v296_v11  ;;  %v1040_v19 = vld [vmem:[%s987_s9 + $0x10] sm:$0xff]  ;;  %v300_v22 = vadd.f32 %v299_v18, %v1035_v17  ;;  %v315_v27 = vsel %vm286_vm0, %v1048_v24, 0.0  ;;  %v312_v31 = vadd.f32 %v311_v29, %v1059_v28  ;;  %v328_v32 = vld [vmem:[%s1192_s1 + $0x8] sm:$0xff]  ;;  %v327_v33 = vld [vmem:[%s1192_s1] sm:$0xff]  ;;  %v344_v39 = vadd.s32 4294967288, %v342_v38  ;;  %s524_s14 = scalar_lea.sflag [#allocation4], %s981_s7 }
  0x49   : > { %289 = vadd.xlane.f32.xlu0 %v288_v12  ;;  %v292_v23 = vadd.f32 %v291_v20, %v1040_v19  ;;  %v1054_v26 = vld [vmem:[%s987_s9 + $0x70] sm:$0xff]  ;;  %380 = vmatpush.msra.mxu0 %v328_v32  ;;  %v387_v11 = vld [vmem:[%s1194_s3] sm:$0xf]  ;;  %vm396_vm6 = vcmask 1043456   ;;  %vm392_vm7 = vcmask 31744   ;;  %s645_s10 = sshll.u32 (%p922_p9), %s899_s22, 2 }
  0x4a   : > { %v316_v30 = vadd.f32 %v315_v27, %v1054_v26  ;;  %641 = vmatpush.msk.msra.mxu1 %vm396_vm6, %v387_v11  ;;  %v718_v12 = vld [vmem:[%s1193_s2] ss:$0 sm:$0xff]  ;;  %s532_s15 = ssub.s32 (%p922_p9), 7, %s645_s10 }
  0x4b   : > { %381 = vmatpush.msra.mxu0 %v327_v33  ;;  %p533_p6 = scmp.lt.s32.totalorder (%p922_p9), %s532_s15, 4 }
  0x4f   : > { %309 = vadd.xlane.f32.xlu2 %v308_v21  ;;  %v441_v21 = vshrl.u32 %v341_v37, 7 }
  0x50   : > { %301 = vadd.xlane.f32.xlu1 %v300_v22 }
  0x51   : > { %293 = vadd.xlane.f32.xlu0 %v292_v23  ;;  %714 = vset.pattern.permute.xlu1 %v441_v21  ;;  %v448_v22 = vadd.s32 8, %v441_v21  ;;  %v719_v23 = vld [vmem:[%s1195_s4] ss:$0 sm:$0xff] }
  0x52   : > { %712 = vset.pattern.permute.xlu2 %v441_v21 }
  0x53   : > { %713 = vset.pattern.permute.xlu0 %v448_v22 }
  0x58   : > { %317 = vadd.xlane.f32.xlu1 %v316_v30 }
  0x59   : > { %313 = vadd.xlane.f32.xlu0 %v312_v31 }
  0xba   : > { %v306_v34 = vpop.xlane.xlu2 %305 }
  0xbb   : > { %v298_v35 = vpop.xlane.xlu1 %297  ;;  %v323_v47 = vmul.f32 0.00625, %v306_v34 }
  0xbc   : > { %v290_v36 = vpop.xlane.xlu0 %289  ;;  %v321_v41 = vmul.f32 0.00625, %v298_v35 }
  0xbd   : > { %v319_v44 = vmul.f32 0.00625, %v290_v36  ;;  %v351_v53 = vperm.slane %v323_v47, %v342_v38 }
  0xbe   : > { %v348_v51 = vperm.slane %v321_v41, %v342_v38 }
  0xbf   : > { %v343_v52 = vperm.slane %v319_v44, %v342_v38 }
  0xc2   : > { %v310_v40 = vpop.xlane.xlu2 %309 }
  0xc3   : > { %v302_v42 = vpop.xlane.xlu1 %301  ;;  %v324_v48 = vmul.f32 0.00625, %v310_v40 }
  0xc4   : > { %v294_v43 = vpop.xlane.xlu0 %293  ;;  %v322_v45 = vmul.f32 0.00625, %v302_v42 }
  0xc5   : > { %v320_v46 = vmul.f32 0.00625, %v294_v43  ;;  %v352_v54 = vperm.slane %v324_v48, %v344_v39 }
  0xc6   : > { %v349_v49 = vperm.slane %v322_v45, %v344_v39 }
  0xc7   : > { %v345_v50 = vperm.slane %v320_v46, %v344_v39  ;;  %v353_v61 = vsel %vm346_vm1, %v352_v54, %v351_v53 }
  0xc8   : > { %v350_v55 = vsel %vm346_vm1, %v349_v49, %v348_v51 }
  0xc9   : > { %v347_v56 = vsel %vm346_vm1, %v345_v50, %v343_v52 }
  0xca   : > { %v358_v62 = vsel %vm357_vm2, %v350_v55, %v347_v56 }
  0xcb   : > { %v318_v57 = vpop.xlane.xlu1 %317  ;;  %v360_v8 = vsel %vm359_vm3, %v353_v61, %v358_v62 }
  0xcc   : > { %v314_v58 = vpop.xlane.xlu0 %313  ;;  %v326_v59 = vmul.f32 0.00625, %v318_v57 }
  0xcd   : > { %v325_v60 = vmul.f32 0.00625, %v314_v58 }
  0xce   : > { %v355_v63 = vperm.slane %v326_v59, %v344_v39 }
  0xcf   : > { %v354_v3 = vperm.slane %v325_v60, %v342_v38 }
  0xd1   : > { %v356_v7 = vsel %vm346_vm1, %v355_v63, %v354_v3 }
  0xd2   : > { %v362_v9 = vsel %vm361_vm4, %v356_v7, %v360_v8 }
  0xd3   : > { %640 = vmatmul.msk.f32.vlgmr.msra.gmra.mxu0 %vm363_vm5, %v362_v9 }
 0x150   : > { %v383_v16 = vpop.f32.mrf.mxu0 }
 0x151   : > { %v384_v18 = vadd.f32 %v718_v12, %v383_v16 }
 0x153   : > { %v386_v20 = vmax.f32 %v384_v18, 0.0 }
 0x155   : > { %642 = vmatmul.msk.f32.vlgmr.msra.gmra.mxu1 %vm392_vm7, %v386_v20 }
 0x1d2   : > { %v417_v27 = vpop.f32.mrf.mxu1 }
 0x1d3   : > { %v418_v29 = vadd.f32 %v719_v23, %v417_v27 }
 0x1d5   : > { %v643_v30 = vmul.f32 -1.442695, %v418_v29 }
 0x1d7   : > { %720 = vpow2.f32 %v643_v30 }
 0x1dd   : > { %v721_v31 = vpop.eup %720 }
 0x1de   : > { %v423_v32 = vadd.f32 1.0, %v721_v31 }
 0x1e0   : > { %722 = vrcp.f32 %v423_v32  ;;  %v435_v36 = vand.u32 2147483648, %v423_v32  ;;  %v433_v38 = vand.u32 2147483647, %v423_v32  ;;  %vm429_vm9 = vweird.f32 %v423_v32 }
 0x1e2   : > { %v436_v40 = vor.u32 1.1754944e-38, %v435_v36  ;;  %vm434_vm11 = vcmp.eq.f32.partialorder %v433_v38, 8.507059e+37 }
 0x1e6   : > { %v723_v33 = vpop.eup %722 }
 0x1e7   : > { %v425_v34 = vmul.f32 %v723_v33, %v423_v32  ;;  %vm430_vm8 = vweird.f32 %v723_v33 }
 0x1e8   : > { %vm431_vm10 = vmor %vm429_vm9, %vm430_vm8 }
 0x1e9   : > { %v426_v35 = vsub.f32 1.0, %v425_v34 }
 0x1eb   : > { %v427_v37 = vmul.f32 %v723_v33, %v426_v35 }
 0x1ed   : > { %v428_v39 = vadd.f32 %v723_v33, %v427_v37 }
 0x1ef   : > { %v432_v41 = vsel %vm431_vm10, %v723_v33, %v428_v39 }
 0x1f0   : > { %v437_v42 = vsel %vm434_vm11, %v436_v40, %v432_v41 }
 0x1f1   : > { %v452_v43 = vperm.slane %v437_v42, 1  ;;  %v439_v44 = vperm.slane %v437_v42, 0  ;;  %v465_v45 = vperm.slane %v437_v42, 2  ;;  %v478_v46 = vperm.slane %v437_v42, 3 }
 0x1f3   : > { %457 = vperm.xlu1 %714, %v452_v43   ;;  %450 = vperm.xlu0 %713, %v439_v44  }
 0x1f4   : > { %444 = vperm.xlu2 %712, %v439_v44  }
 0x1fb   : > { %717 = vset.pattern.permute.xlu1 %v448_v22 }
 0x1fc   : > { %715 = vset.pattern.permute.xlu2 %v448_v22 }
 0x203   : > { %476 = vperm.xlu1 %717, %v465_v45  }
 0x204   : > { %463 = vperm.xlu2 %715, %v452_v43  }
 0x20b   : > { %489 = vperm.xlu1 %717, %v478_v46  }
 0x20c   : > { %716 = vset.pattern.permute.xlu2 %v441_v21 }
 0x214   : > { %470 = vperm.xlu2 %716, %v465_v45  }
 0x21c   : > { %483 = vperm.xlu2 %716, %v478_v46  }
 0x24e   : > { %v445_v47 = vpop.permute.xlu2 %444 }
 0x24f   : > { %v491_v48 = vadd.f32 %v445_v47, %v1008_v5  ;;  %v492_v49 = vadd.f32 %v445_v47, %v1011_v6 }
 0x251   : > { %507 = vst [vmem:[%s1088_s11] sm:$0xff] %v491_v48 }
 0x252   : > { %508 = vst.msk [vmem:[%s1088_s11 + $0x8] sm:$0xff] %vm286_vm0, %v492_v49 }
 0x25e   : > { %v464_v50 = vpop.permute.xlu2 %463 }
 0x25f   : > { %v497_v51 = vadd.f32 %v464_v50, %v1035_v17  ;;  %v498_v5 = vadd.f32 %v464_v50, %v1024_v13 }
 0x261   : > { %513 = vst [vmem:[%s1088_s11 + $0x30] sm:$0xff] %v497_v51 }
 0x262   : > { %514 = vst.msk [vmem:[%s1088_s11 + $0x38] sm:$0xff] %vm286_vm0, %v498_v5 }
 0x265   : > { %v458_v6 = vpop.permute.xlu1 %457  ;;  %v451_v52 = vpop.permute.xlu0 %450 }
 0x266   : > { %v495_v53 = vadd.f32 %v458_v6, %v1000_v2  ;;  %v496_v54 = vadd.f32 %v458_v6, %v1005_v4  ;;  %v493_v55 = vadd.f32 %v451_v52, %v1040_v19  ;;  %v494_v56 = vadd.f32 %v451_v52, %v1027_v14 }
 0x268   : > { %511 = vst [vmem:[%s1088_s11 + $0x20] sm:$0xff] %v495_v53 }
 0x269   : > { %512 = vst.msk [vmem:[%s1088_s11 + $0x28] sm:$0xff] %vm286_vm0, %v496_v54 }
 0x26a   : > { %509 = vst [vmem:[%s1088_s11 + $0x10] sm:$0xff] %v493_v55 }
 0x26b   : > { %510 = vst.msk [vmem:[%s1088_s11 + $0x18] sm:$0xff] %vm286_vm0, %v494_v56 }
 0x26e   : > { %v471_v13 = vpop.permute.xlu2 %470 }
 0x26f   : > { %v499_v17 = vadd.f32 %v471_v13, %v994_v0  ;;  %v500_v2 = vadd.f32 %v471_v13, %v997_v1 }
 0x271   : > { %515 = vst [vmem:[%s1088_s11 + $0x40] sm:$0xff] %v499_v17 }
 0x272   : > { %516 = vst.msk [vmem:[%s1088_s11 + $0x48] sm:$0xff] %vm286_vm0, %v500_v2 }
 0x275   : > { %v477_v4 = vpop.permute.xlu1 %476 }
 0x276   : > { %v501_v14 = vadd.f32 %v477_v4, %v1030_v15  ;;  %v502_v19 = vadd.f32 %v477_v4, %v1019_v10  ;;  %v484_v57 = vpop.permute.xlu2 %483 }
 0x277   : > { %v503_v58 = vadd.f32 %v484_v57, %v1059_v28  ;;  %v504_v59 = vadd.f32 %v484_v57, %v1051_v25 }
 0x278   : > { %517 = vst [vmem:[%s1088_s11 + $0x50] sm:$0xff] %v501_v14 }
 0x279   : > { %518 = vst.msk [vmem:[%s1088_s11 + $0x58] sm:$0xff] %vm286_vm0, %v502_v19 }
 0x27a   : > { %519 = vst [vmem:[%s1088_s11 + $0x60] sm:$0xff] %v503_v58 }
 0x27b   : > { %520 = vst.msk [vmem:[%s1088_s11 + $0x68] sm:$0xff] %vm286_vm0, %v504_v59 }
 0x27d   : > { %v490_v0 = vpop.permute.xlu1 %489  ;;  %530 = sbr.rel (!%p922_p9) target bundleno = 673 (0x2a1), region = 48 }
 0x27e   : > { %v505_v1 = vadd.f32 %v490_v0, %v1054_v26  ;;  %v506_v60 = vadd.f32 %v490_v0, %v1048_v24 }
 0x280   : > { %521 = vst [vmem:[%s1088_s11 + $0x70] sm:$0xff] %v505_v1 }
 0x281   : > { %522 = vst.msk [vmem:[%s1088_s11 + $0x78] sm:$0xff] %vm286_vm0, %v506_v60 }
 0x282   : > { %s1213_s15 = smov (!%p533_p6, %s532_s15), 4 }
 0x283   : > { %s664_s9 = sshll.u32 %s1213_s15, 5 }
 0x284   : > { %s538_s28 = ssub.s32 128, %s664_s9 }
 0x285   : > { %s539_s13 = sshll.u32 %s538_s28, 4 }
 0x286   : > { %540 = vsyncadd %s524_s14, %s539_s13  ;;  %p1137_p11 = scmp.ne.s32.totalorder %s664_s9, 0  ;;  %s666_s26 = sshll.u32 %s899_s22, 7 }
 0x287   : > { %s544_s23 = scalar_lea.hbm %s1196_s5, %s666_s26  ;;  %s547_s25 = sshll.u32 %s1088_s11, 4  ;;  %s1146_s25 = int_to_ptr.vmem [resolvable:$true] %s547_s25 }
 0x288   : > { %s549_s12 = sshll.u32 %s544_s23, 4  ;;  %s668_s16 = sshll.u32 %s1213_s15, 9  ;;  %s1148_s12 = int_to_ptr.hbm [resolvable:$true] %s549_s12 }
 0x289   : > { %s763_s8 = sshra.s32 %s1146_s25, 4  ;;  %s765_s10 = sshrl.u32 %s668_s16, 4  ;;  %s764_s8 = int_to_ptr.vmem [resolvable:$true] %s763_s8 }
 0x28a   : > { %s770_s9 = scalar_lea.vmem %s764_s8, %s765_s10  ;;  %s845_s22 = smov [#allocation5]  }
 0x28b   : > { %p771_p9 = scmp.ne.s32.totalorder %s764_s8, %s770_s9  ;;  %s774_s28 = scalar_lea.vmem %s845_s22, 256 }
 0x28c   : > { %p776_p7 = scmp.lt.s32.totalorder %s774_s28, %s770_s9 }
 0x28d   : > { %p772_p13 = pnand %p771_p9, %p1137_p11 }
 0x28f   : > { %p773_p5 = pneg %p772_p13 }
 0x291   : > { %p778_p8 = pnand %p776_p7, %p773_p5 }
 0x293   : > { %781 = shalt.err (!%p778_p8)
}
 0x294   : > { %s782_s11 = sshra.s32 %s1148_s12, 4  ;;  %s793_s17 = scalar_lea.hbm %s1196_s5, 224  ;;  %s783_s11 = int_to_ptr.hbm [resolvable:$true] %s782_s11 }
 0x295   : > { %s789_s13 = scalar_lea.hbm %s783_s11, %s765_s10  ;;  %p794_p2 = scmp.lt.s32.totalorder %s783_s11, %s1196_s5 }
 0x296   : > { %p790_p12 = scmp.ne.s32.totalorder %s783_s11, %s789_s13  ;;  %p795_p3 = scmp.lt.s32.totalorder %s793_s17, %s789_s13 }
 0x298   : > { %p791_p0 = pnand %p790_p12, %p1137_p11  ;;  %p796_p4 = por %p795_p3, %p794_p2 }
 0x29a   : > { %p792_p1 = pneg %p791_p0 }
 0x29c   : > { %p797_p6 = pnand %p796_p4, %p792_p1 }
 0x29e   : > { %800 = shalt.err (!%p797_p6)
}
 0x29f   : > { %s846_s9 = smov 256   ;;  %s847_s10 = smov 16  }
 0x2a0   : > { %555 = dma.vmem_to_hbm [thread:$0]  (%p1137_p11), %s1146_s25, %s668_s16, %s1148_s12, %s524_s14, %s846_s9, %s846_s9, %s847_s10  }
 0x2a1 PF: > { %s564_s22 = sand.u32 1, %s828_s18   ;;  %p1205_p9 = scmp.ge.s32.totalorder %s840_s21, 2 }
 0x2a2   : > { %s565_s28 = scalar_lea.sflag [#allocation4], %s564_s22 }
 0x2a3   : > { %p672_p13 = pnand %p1205_p9, %p926_p10 }
 0x2a5   : > { %p673_p5 = pneg %p672_p13 }
 0x2a7   : > { %823 = dma.done.wait (%p673_p5), %s565_s28, 2048  }
 0x2a8   : > { %825 = vsyncadd (%p673_p5), %s565_s28, 4294965248  ;;  %p18_p7 = scmp.ge.s32.totalorder %s903_s24, 4   ;;  %s1206_s18 = smov %s832_s19 }
 0x2a9   : > { %s1207_s19 = smov %s836_s20  ;;  %s1208_s20 = smov %s915_s27 }
 0x2aa   : > { %s1209_s21 = smov %s903_s24  ;;  %20 = sbr.rel (!%p18_p7) target bundleno = 5 (0x5), region = 85 }
 0x2af   :  { %571 = vsyncpa [#allocation3], 1 }
 0x2b0   :  { %573 = vsyncpa [#allocation3 + $0x1], 1 }
 0x2b1   :  { %574 = vsyncpa [#allocation4], 1 }
 0x2b2   :  { %576 = vsyncpa [#allocation4 + $0x1], 1 }

</bundles_post_ra>
